<compile_context>
chip_gen: v5e
topology: v5e:2x2
jax: 0.10.0
libtpu: 0.0.40
codegen_flags: <defaults>
</compile_context>

<pallas_src>
import functools

import jax
import jax.numpy as jnp
from jax.experimental import pallas as pl
from jax.experimental.pallas import tpu as pltpu


# ----------------------------- helpers --------------------------------------

_LANE = 128
_VMEM_LIMIT_BYTES = 48 * 1024 * 1024    # below physical VMEM on v5e/v6e/v7x
_XW_RESIDENT_BYTES = 8 * 1024 * 1024    # leave room for A double-buffer + acc + out


def _round_up(x, m):
    return pl.cdiv(x, m) * m


def _pad2d(a, rows, cols):
    return jnp.pad(a, ((0, rows - a.shape[0]), (0, cols - a.shape[1])))


def _choose_tiles(n):
    """Pick (n_pad, TM, TK).

    Large tiles (TM=512, TK up to 2048) amortize the ~0.35us per-grid-step
    overhead.  N is padded UP to a multiple of the tiles rather than shrinking
    tiles for awkward N: the extra zero rows/cols are exact and cost O(N*TK)
    bytes, negligible vs N^2.
    """
    n_pad = _round_up(n, _LANE)
    if n_pad <= 512:
        return n_pad, n_pad, n_pad                       # single tile
    tm = 512
    n_pad = _round_up(n_pad, tm)
    tk = tm
    for cand in (2048, 1536, 1024, 512):                 # largest TK dividing n_pad
        if cand <= n_pad and n_pad % cand == 0:
            tk = cand
            break
    return n_pad, tm, tk


def _apply_activation(name, h, prelu_w):
    """Elementwise activations (f32), matching torch defaults."""
    if name == "elu":           # alpha = 1.0
        return jnp.where(h > 0, h, jnp.exp(h) - 1.0)
    if name == "gelu":          # exact (erf-based), torch default
        return 0.5 * h * (1.0 + jax.lax.erf(h * (1.0 / jnp.sqrt(2.0))))
    if name == "prelu":         # learnable slope (init 0.25)
        return jnp.where(h > 0, h, prelu_w * h)
    if name == "relu":
        return jnp.maximum(h, 0.0)
    if name == "sigmoid":
        return jax.nn.sigmoid(h)
    if name == "tanh":
        return jnp.tanh(h)
    if name == "selu":
        alpha = 1.6732632423543772
        scale = 1.0507009873554805
        return scale * jnp.where(h > 0, h, alpha * (jnp.exp(h) - 1.0))
    if name == "LeakyReLU":
        return jnp.where(h > 0, h, 0.01 * h)
    if name == "none":
        return h
    raise ValueError(f"unsupported activation: {name}")
    # TODO(synk): 'linear' activation (nn.Linear(out,out)) not wired; unused by default.


# ----------------------------- Pallas kernel --------------------------------


def gcn_agg_kernel(a_ref, xw_ref, b_ref, prelu_ref, o_ref, acc_ref, *, activ, tk):
    """out[i] = act( sum_k A[i,k] @ XW[k] + b ).  A_hat streams; XW is either
    VMEM-resident (sliced per k) or streamed as a (TK, Fo) slab."""
    k = pl.program_id(1)

    @pl.when(k == 0)
    def _init():
        acc_ref[...] = jnp.zeros_like(acc_ref)

    if xw_ref.shape[0] == tk:
        xw = xw_ref[...]                                   # streamed (TK, Fo) slab
    else:
        off = pl.multiple_of(k * tk, tk)                   # resident full XW: slice
        xw = xw_ref[pl.ds(off, tk), :]

    # Aggregate: (TM, TK) @ (TK, Fo), bf16 MXU inputs, f32 accumulation.
    acc_ref[...] += jnp.dot(a_ref[...], xw, preferred_element_type=jnp.float32)

    # Bias + activation only once per output tile, in the finalize step.
    @pl.when(k == pl.num_programs(1) - 1)
    def _finalize():
        h = acc_ref[...] + b_ref[...]                      # (TM, Fo) + (1, Fo), f32
        # F.dropout(training=False) -> identity
        h = _apply_activation(activ, h, prelu_ref[0, 0])
        o_ref[...] = h.astype(o_ref.dtype)


def gcn_aggregate(a_hat, xw, b, prelu_w, activ, out_dtype, *, tm, tk):
    """Fused aggregation + bias + activation on padded operands."""
    n_pad = a_hat.shape[0]
    f_out_pad = xw.shape[1]
    grid = (n_pad // tm, n_pad // tk)

    # Keep XW resident in VMEM (read from HBM once) when it fits the budget;
    # otherwise stream (TK, Fo) slabs (re-fetched per row tile).
    xw_resident = n_pad * f_out_pad * xw.dtype.itemsize <= _XW_RESIDENT_BYTES
    if xw_resident:
        xw_spec = pl.BlockSpec((n_pad, f_out_pad), lambda i, k: (0, 0))
    else:
        xw_spec = pl.BlockSpec((tk, f_out_pad), lambda i, k: (k, 0))

    kernel = functools.partial(gcn_agg_kernel, activ=activ, tk=tk)
    return pl.pallas_call(
        kernel,
        out_shape=jax.ShapeDtypeStruct((n_pad, f_out_pad), out_dtype),
        grid=grid,
        in_specs=[
            pl.BlockSpec((tm, tk), lambda i, k: (i, k)),            # A_hat (dominant stream)
            xw_spec,                                                # XW
            pl.BlockSpec((1, f_out_pad), lambda i, k: (0, 0)),      # bias (f32)
            pl.BlockSpec(memory_space=pltpu.MemorySpace.SMEM),      # prelu scalar
        ],
        out_specs=pl.BlockSpec((tm, f_out_pad), lambda i, k: (i, 0)),
        scratch_shapes=[pltpu.VMEM((tm, f_out_pad), jnp.float32)],
        compiler_params=pltpu.CompilerParams(
            dimension_semantics=("parallel", "arbitrary"),
            vmem_limit_bytes=_VMEM_LIMIT_BYTES,
        ),
    )(a_hat, xw, b, prelu_w)


# ------------------------------ glue (plain JAX) ------------------------------


def gcn_normalized_adjacency(edge_index, edge_weight, num_nodes, num_nodes_out=None):
    """Dense D^{-1/2} (A + I) D^{-1/2} (PyG GCNConv gcn_norm defaults), built
    directly into a zero-padded (num_nodes_out, num_nodes_out) buffer."""
    size = num_nodes if num_nodes_out is None else num_nodes_out
    row, col = edge_index[0], edge_index[1]
    loop = jnp.arange(num_nodes, dtype=edge_index.dtype)
    row = jnp.concatenate([row, loop])
    col = jnp.concatenate([col, loop])
    ew = jnp.concatenate(
        [edge_weight, jnp.ones((num_nodes,), dtype=edge_weight.dtype)]
    )
    deg = jnp.zeros((num_nodes,), dtype=ew.dtype).at[col].add(ew)
    deg_inv_sqrt = jnp.where(deg > 0, 1.0 / jnp.sqrt(deg), 0.0)
    norm = deg_inv_sqrt[row] * ew * deg_inv_sqrt[col]
    # out[target] += norm * x[source]  =>  A_hat[target, source] = norm
    return jnp.zeros((size, size), dtype=ew.dtype).at[col, row].add(norm)


def glorot(key, shape):
    fan_in, fan_out = shape
    limit = (6.0 / (fan_in + fan_out)) ** 0.5
    return jax.random.uniform(key, shape, jnp.float32, -limit, limit)


def init_basic_gcn_params(key, in_size, out_size, h_sizes, activs):
    hidden_sizes = [in_size, *h_sizes, out_size]
    params = []
    for k in range(len(hidden_sizes) - 1):
        key, wk = jax.random.split(key)
        w = glorot(wk, (hidden_sizes[k], hidden_sizes[k + 1]))
        b = jnp.zeros((1, hidden_sizes[k + 1]), jnp.float32)   # GCNConv bias init = 0
        params.append((w, b))
    # One nn.PReLU() weight per activation slot (init 0.25); unused for non-prelu.
    prelu_ws = [jnp.full((1, 1), 0.25, jnp.float32) for _ in activs]
    return params, prelu_ws


def basic_gcn_forward(params, prelu_ws, activs, x, edge_index, edge_weights,
                      compute_dtype=jnp.bfloat16):
    n = x.shape[0]
    n_pad, tm, tk = _choose_tiles(n)

    # A_hat built directly at padded size (exact f32 scatter-add), cast once to
    # bf16 for the dominant HBM stream.
    a_hat_p = gcn_normalized_adjacency(
        edge_index, edge_weights, n, n_pad).astype(compute_dtype)

    f_in0 = x.shape[1]
    h = _pad2d(x, n_pad, _round_up(f_in0, _LANE)).astype(compute_dtype)

    # Note: like the PyTorch module, zip(hidden, activs) truncates to the shorter.
    layers = list(zip(params, activs, prelu_ws))
    if not layers:
        return x

    out = None
    f_out_last = f_in0
    for li, ((w, b), activ, pw) in enumerate(layers):
        f_in_l, f_out_l = w.shape
        f_in_pad = _round_up(f_in_l, _LANE)
        f_out_pad = _round_up(f_out_l, _LANE)
        w_p = _pad2d(w, f_in_pad, f_out_pad).astype(compute_dtype)
        b_p = _pad2d(b, 1, f_out_pad)                               # f32 bias
        # Projection precomputed once per layer (O(N*F*F), tiny vs aggregation):
        # bf16 inputs, f32 MXU accumulate, then bf16 for the aggregation kernel.
        xw = jnp.dot(h, w_p, preferred_element_type=jnp.float32).astype(compute_dtype)
        is_last = li == len(layers) - 1
        out_dtype = jnp.float32 if is_last else compute_dtype       # bf16 intermediates
        out = gcn_aggregate(a_hat_p, xw, b_p, pw, activ, out_dtype, tm=tm, tk=tk)
        h = out                                                     # next-layer input
        f_out_last = f_out_l

    return out[:n, :f_out_last]


def basic_gcn_reference(params, prelu_ws, activs, x, edge_index, edge_weights,
                        compute_dtype=jnp.bfloat16):
    """Pure-JAX reference replicating the kernel's bf16 quantization."""
    n = x.shape[0]
    a_hat = gcn_normalized_adjacency(edge_index, edge_weights, n)
    a32 = a_hat.astype(compute_dtype).astype(jnp.float32)
    h32 = x.astype(compute_dtype).astype(jnp.float32)
    out = x
    for (w, b), activ, pw in zip(params, activs, prelu_ws):
        w32 = w.astype(compute_dtype).astype(jnp.float32)
        xw = (h32 @ w32).astype(compute_dtype).astype(jnp.float32)
        out = a32 @ xw + b
        out = _apply_activation(activ, out, pw[0, 0])
        h32 = out.astype(compute_dtype).astype(jnp.float32)
    return out


# ---------------------------------- main --------------------------------------

if __name__ == "__main__":
    key = jax.random.PRNGKey(0)

    # Small, forward-consistent shapes.
    num_nodes, num_edges = 16, 32
    in_size, h_sizes, out_size = 8, [32, 16], 4
    activs = ["elu", "gelu", "prelu"]   # one per GCN layer (3 layers)

    k_feat, k_src, k_dst, k_w, k_param = jax.random.split(key, 5)
    x = jax.random.normal(k_feat, (num_nodes, in_size), jnp.float32)
    edge_index = jnp.stack(
        [
            jax.random.randint(k_src, (num_edges,), 0, num_nodes),
            jax.random.randint(k_dst, (num_edges,), 0, num_nodes),
        ],
        axis=0,
    ).astype(jnp.int32)
    edge_weights = jax.random.uniform(k_w, (num_edges,), jnp.float32, 0.1, 1.0)

    params, prelu_ws = init_basic_gcn_params(k_param, in_size, out_size, h_sizes, activs)

    out = basic_gcn_forward(params, prelu_ws, activs, x, edge_index, edge_weights)
    out = jax.block_until_ready(out)

    ref = basic_gcn_reference(params, prelu_ws, activs, x, edge_index, edge_weights)
    assert out.shape == (num_nodes, out_size)
    assert jnp.allclose(out, ref, atol=2e-3, rtol=2e-3), (
        float(jnp.max(jnp.abs(out - ref)))
    )

    print("KERNEL_OK")
</pallas_src>

<mosaic_0001>
module attributes {stable_mosaic.version = 11 : i64} {
  func.func @gcn_agg_kernel(%arg0: i32, %arg1: i32, %arg2: memref<128x128xbf16, #tpu.memory_space<vmem>>, %arg3: memref<128x128xbf16, #tpu.memory_space<vmem>>, %arg4: memref<1x128xf32, #tpu.memory_space<vmem>>, %arg5: memref<1x1xf32, #tpu.memory_space<smem>>, %arg6: memref<128x128xbf16, #tpu.memory_space<vmem>>, %arg7: memref<128x128xf32, #tpu.memory_space<vmem>>) attributes {dimension_semantics = [#tpu.dimension_semantics<parallel>, #tpu.dimension_semantics<arbitrary>], iteration_bounds = array<i64: 1, 1>, scalar_prefetch = 0 : i64, scratch_operands = 1 : i64, tpu.core_type = #tpu.core_type<tc>, window_params = [{transform_indices = @transform_0, window_bounds = array<i64: 128, 128>}, {pipeline_mode = #tpu.pipeline_mode<synchronous>, transform_indices = @transform_1, window_bounds = array<i64: 128, 128>}, {pipeline_mode = #tpu.pipeline_mode<synchronous>, transform_indices = @transform_2, window_bounds = array<i64: 1, 128>}, {transform_indices = @transform_3, window_bounds = array<i64: 1, 1>}, {transform_indices = @transform_4, window_bounds = array<i64: 128, 128>}]} {
    %c0_i32 = arith.constant 0 : i32
    %0 = arith.cmpi eq, %arg1, %c0_i32 : i32
    %1 = arith.extui %0 : i1 to i32
    %c0_i32_0 = arith.constant 0 : i32
    %2 = arith.cmpi ne, %1, %c0_i32_0 : i32
    scf.if %2 {
      %cst_10 = arith.constant 0.000000e+00 : f32
      %12 = vector.broadcast %cst_10 : f32 to vector<128x128xf32>
      %c0_11 = arith.constant 0 : index
      %c0_12 = arith.constant 0 : index
      %13 = vector.load %arg7[%c0_11, %c0_12] : memref<128x128xf32, #tpu.memory_space<vmem>>, vector<128x128xf32>
      tpu.vector_store %arg7[%c0_11, %c0_12], %12 {strides = array<i32>} : memref<128x128xf32, #tpu.memory_space<vmem>>, vector<128x128xf32>,
    } else {
    }
    %c0 = arith.constant 0 : index
    %c0_1 = arith.constant 0 : index
    %3 = vector.load %arg3[%c0, %c0_1] : memref<128x128xbf16, #tpu.memory_space<vmem>>, vector<128x128xbf16>
    %c0_2 = arith.constant 0 : index
    %c0_3 = arith.constant 0 : index
    %4 = vector.load %arg7[%c0_2, %c0_3] : memref<128x128xf32, #tpu.memory_space<vmem>>, vector<128x128xf32>
    %c0_4 = arith.constant 0 : index
    %c0_5 = arith.constant 0 : index
    %5 = vector.load %arg2[%c0_4, %c0_5] : memref<128x128xbf16, #tpu.memory_space<vmem>>, vector<128x128xbf16>
    %cst = arith.constant dense<0.000000e+00> : vector<128x128xf32>
    %6 = tpu.matmul %5, %3, %cst {dimension_numbers = #tpu.dot_dimension_numbers<[1], [0], [0], [1], [0, 0, 1, 1], [], []>} : vector<128x128xbf16>, vector<128x128xbf16>, vector<128x128xf32> -> vector<128x128xf32>
    %7 = arith.addf %4, %6 : vector<128x128xf32>
    %c0_6 = arith.constant 0 : index
    %c0_7 = arith.constant 0 : index
    %8 = vector.load %arg7[%c0_6, %c0_7] : memref<128x128xf32, #tpu.memory_space<vmem>>, vector<128x128xf32>
    tpu.vector_store %arg7[%c0_6, %c0_7], %7 {strides = array<i32>} : memref<128x128xf32, #tpu.memory_space<vmem>>, vector<128x128xf32>,
    %c0_i32_8 = arith.constant 0 : i32
    %9 = arith.cmpi eq, %arg1, %c0_i32_8 : i32
    %10 = arith.extui %9 : i1 to i32
    %c0_i32_9 = arith.constant 0 : i32
    %11 = arith.cmpi ne, %10, %c0_i32_9 : i32
    scf.if %11 {
      %c0_10 = arith.constant 0 : index
      %c0_11 = arith.constant 0 : index
      %12 = vector.load %arg7[%c0_10, %c0_11] : memref<128x128xf32, #tpu.memory_space<vmem>>, vector<128x128xf32>
      %c0_12 = arith.constant 0 : index
      %c0_13 = arith.constant 0 : index
      %13 = vector.load %arg4[%c0_12, %c0_13] : memref<1x128xf32, #tpu.memory_space<vmem>>, vector<1x128xf32>
      %14 = vector.broadcast %13 : vector<1x128xf32> to vector<128x128xf32>
      %15 = arith.addf %12, %14 : vector<128x128xf32>
      %cst_14 = arith.constant 0.000000e+00 : f32
      %16 = vector.broadcast %cst_14 : f32 to vector<128x128xf32>
      %17 = arith.cmpf ogt, %15, %16 : vector<128x128xf32>
      %18 = math.exp %15 : vector<128x128xf32>
      %cst_15 = arith.constant 1.000000e+00 : f32
      %19 = vector.broadcast %cst_15 : f32 to vector<128x128xf32>
      %20 = arith.subf %18, %19 : vector<128x128xf32>
      %21 = arith.select %17, %15, %20 : vector<128x128xi1>, vector<128x128xf32>
      %22 = arith.truncf %21 : vector<128x128xf32> to vector<128x128xbf16>
      %c0_16 = arith.constant 0 : index
      %c0_17 = arith.constant 0 : index
      %23 = vector.load %arg6[%c0_16, %c0_17] : memref<128x128xbf16, #tpu.memory_space<vmem>>, vector<128x128xbf16>
      tpu.vector_store %arg6[%c0_16, %c0_17], %22 {strides = array<i32>} : memref<128x128xbf16, #tpu.memory_space<vmem>>, vector<128x128xbf16>,
    } else {
    }
    return
  }
  func.func @transform_0(%arg0: i32, %arg1: i32) -> (i32, i32) {
    %c0_i32 = arith.constant 0 : i32
    return %arg0, %arg1 : i32, i32
  }
  func.func @transform_1(%arg0: i32, %arg1: i32) -> (i32, i32) {
    %c0_i32 = arith.constant 0 : i32
    %c0_i32_0 = arith.constant 0 : i32
    %c0_i32_1 = arith.constant 0 : i32
    return %c0_i32, %c0_i32_0 : i32, i32
  }
  func.func @transform_2(%arg0: i32, %arg1: i32) -> (i32, i32) {
    %c0_i32 = arith.constant 0 : i32
    %c0_i32_0 = arith.constant 0 : i32
    %c0_i32_1 = arith.constant 0 : i32
    return %c0_i32, %c0_i32_0 : i32, i32
  }
  func.func @transform_3(%arg0: i32, %arg1: i32) -> (i32, i32) {
    %c0_i32 = arith.constant 0 : i32
    %c0_i32_0 = arith.constant 0 : i32
    %c0_i32_1 = arith.constant 0 : i32
    return %c0_i32, %c0_i32_0 : i32, i32
  }
  func.func @transform_4(%arg0: i32, %arg1: i32) -> (i32, i32) {
    %c0_i32 = arith.constant 0 : i32
    %c0_i32_0 = arith.constant 0 : i32
    return %arg0, %c0_i32 : i32, i32
  }
}

</mosaic_0001>

<bundles_post_ra>
// kernel: tpu_custom_call.1
= control target key start
LH: loop header
LB: loop body
LE: loop exit
PB: predicated region body
PF: predicated region fallthrough
CT: control target
= control target key end

     0   :  { %10 = vsyncpa [#allocation5], 0  ;;  %s849_s0 = inlined_call_operand.hbm [shape: bf16[128,128], index: 0, kind: input, shape index: {}]   ;;  %s850_s1 = inlined_call_operand.hbm [shape: bf16[128,128], index: 1, kind: input, shape index: {}]   ;;  %s851_s2 = inlined_call_operand.vmem [shape: f32[1,128], index: 2, kind: input, shape index: {}]   ;;  %s852_s3 = inlined_call_operand.<no memory space> [shape: f32[1,1], index: 3, kind: input, shape index: {}]   ;;  %s853_s4 = inlined_call_operand.hbm [shape: bf16[128,128], index: 4, kind: output, shape index: {}]  }
   0x1   :  { %11 = vsyncpa [#allocation8], 0 }
   0x2   :  { %12 = vsyncpa [#allocation6], 0  ;;  %s17_s17 = sshll.u32 %s849_s0, 4  ;;  %s750_s18 = smov [#allocation4]   ;;  %s18_s17 = int_to_ptr.hbm [resolvable:$true] %s17_s17 }
   0x3   :  { %s19_s19 = sshll.u32 %s750_s18, 4  ;;  %s30_s22 = sshll.u32 %s850_s1, 4  ;;  %s20_s19 = int_to_ptr.vmem [resolvable:$true] %s19_s19  ;;  %s31_s22 = int_to_ptr.hbm [resolvable:$true] %s30_s22 }
   0x4   :  { %s751_s23 = smov 64   ;;  %s752_s3 = smov 4  }
   0x5   :  { %25 = dma.hbm_to_vmem [thread:$0]  %s18_s17, 1024, %s20_s19, [#allocation5], %s751_s23, %s751_s23, %s752_s3  }
   0x6   :  { %s753_s24 = smov [#allocation7]  }
   0x7   :  { %s32_s25 = sshll.u32 %s753_s24, 4  ;;  %s33_s25 = int_to_ptr.vmem [resolvable:$true] %s32_s25 }
   0x8   :  { %38 = dma.hbm_to_vmem [thread:$0]  %s31_s22, 1024, %s33_s25, [#allocation8], %s751_s23, %s751_s23, %s752_s3  }
   0x9   :  { %744 = dma.done.wait [#allocation5], 1024  }
   0xa   :  { %745 = vsyncadd [#allocation5], 4294966272 }
   0xb   :  { %746 = dma.done.wait [#allocation8], 1024  }
   0xc   :  { %747 = vsyncadd [#allocation8], 4294966272  ;;  %v554_v0 = vld [vmem:[#allocation7 + $0x38] sm:$0xff]  ;;  %v553_v1 = vld [vmem:[#allocation7 + $0x30] sm:$0xff]  ;;  %s453_s29 = sshll.u32 %s853_s4, 4  ;;  %s454_s29 = int_to_ptr.hbm [resolvable:$true] %s453_s29 }
   0xd   :  { %215 = vmatpush.bf16.msra.mxu0 %v554_v0  ;;  %610 = vmatpush.bf16.msra.mxu1 %v554_v0  ;;  %v552_v2 = vld [vmem:[#allocation7 + $0x28] sm:$0xff]  ;;  %v551_v3 = vld [vmem:[#allocation7 + $0x20] sm:$0xff]  ;;  %v550_v4 = vld [vmem:[#allocation7 + $0x18] sm:$0xff] }
   0xe   :  { %611 = vmatpush.bf16.msra.mxu2 %v554_v0  ;;  %612 = vmatpush.bf16.msra.mxu3 %v554_v0  ;;  %v549_v5 = vld [vmem:[#allocation7 + $0x10] sm:$0xff]  ;;  %v548_v6 = vld [vmem:[#allocation7 + $0x8] sm:$0xff]  ;;  %v547_v7 = vld [vmem:[#allocation7] sm:$0xff] }
   0xf   :  { %v555_v8 = vld [vmem:[#allocation4] sm:$0xff]  ;;  %v557_v9 = vld [vmem:[#allocation4 + $0x10] sm:$0xff]  ;;  %v556_v12 = vld [vmem:[#allocation4 + $0x8] sm:$0xff] }
  0x10   :  { %v559_v10 = vld [vmem:[#allocation4 + $0x20] sm:$0xff]  ;;  %v561_v11 = vld [vmem:[#allocation4 + $0x30] sm:$0xff]  ;;  %v558_v13 = vld [vmem:[#allocation4 + $0x18] sm:$0xff] }
  0x11   :  { %216 = vmatpush.bf16.msra.mxu0 %v553_v1  ;;  %613 = vmatpush.bf16.msra.mxu1 %v553_v1  ;;  %v560_v14 = vld [vmem:[#allocation4 + $0x28] sm:$0xff]  ;;  %v562_v15 = vld [vmem:[#allocation4 + $0x38] sm:$0xff]  ;;  %v795_v16 = vld [vmem:[%s851_s2] ss:$0 sm:$0xff]  ;;  %s754_s2 = smov [#allocation9]  }
  0x12   :  { %614 = vmatpush.bf16.msra.mxu2 %v553_v1  ;;  %615 = vmatpush.bf16.msra.mxu3 %v553_v1  ;;  %s451_s26 = sshll.u32 %s754_s2, 4  ;;  %s452_s26 = int_to_ptr.vmem [resolvable:$true] %s451_s26 }
  0x15   :  { %217 = vmatpush.bf16.msra.mxu0 %v552_v2  ;;  %616 = vmatpush.bf16.msra.mxu1 %v552_v2 }
  0x16   :  { %617 = vmatpush.bf16.msra.mxu2 %v552_v2  ;;  %618 = vmatpush.bf16.msra.mxu3 %v552_v2 }
  0x19   :  { %218 = vmatpush.bf16.msra.mxu0 %v551_v3  ;;  %619 = vmatpush.bf16.msra.mxu1 %v551_v3 }
  0x1a   :  { %620 = vmatpush.bf16.msra.mxu2 %v551_v3  ;;  %621 = vmatpush.bf16.msra.mxu3 %v551_v3 }
  0x1d   :  { %219 = vmatpush.bf16.msra.mxu0 %v550_v4  ;;  %622 = vmatpush.bf16.msra.mxu1 %v550_v4 }
  0x1e   :  { %623 = vmatpush.bf16.msra.mxu2 %v550_v4  ;;  %624 = vmatpush.bf16.msra.mxu3 %v550_v4 }
  0x21   :  { %220 = vmatpush.bf16.msra.mxu0 %v549_v5  ;;  %625 = vmatpush.bf16.msra.mxu1 %v549_v5 }
  0x22   :  { %626 = vmatpush.bf16.msra.mxu2 %v549_v5  ;;  %627 = vmatpush.bf16.msra.mxu3 %v549_v5 }
  0x25   :  { %221 = vmatpush.bf16.msra.mxu0 %v548_v6  ;;  %628 = vmatpush.bf16.msra.mxu1 %v548_v6 }
  0x26   :  { %629 = vmatpush.bf16.msra.mxu2 %v548_v6  ;;  %630 = vmatpush.bf16.msra.mxu3 %v548_v6 }
  0x29   :  { %222 = vmatpush.bf16.msra.mxu0 %v547_v7  ;;  %631 = vmatpush.bf16.msra.mxu1 %v547_v7 }
  0x2a   :  { %632 = vmatpush.bf16.msra.mxu2 %v547_v7  ;;  %633 = vmatpush.bf16.msra.mxu3 %v547_v7 }
  0x2c   :  { %223 = vmatmul.bf16.vlgmr.msra.gmra.mxu0 %v555_v8  ;;  %233 = vmatmul.bf16.vlgmr.msra.gmra.mxu1 %v557_v9 }
  0x2d   :  { %243 = vmatmul.bf16.vlgmr.msra.gmra.mxu2 %v559_v10  ;;  %253 = vmatmul.bf16.vlgmr.msra.gmra.mxu3 %v561_v11 }
  0x3c   :  { %228 = vmatmul.bf16.gmra.mxu0 %v556_v12  ;;  %238 = vmatmul.bf16.gmra.mxu1 %v558_v13 }
  0x3d   :  { %248 = vmatmul.bf16.gmra.mxu2 %v560_v14  ;;  %258 = vmatmul.bf16.gmra.mxu3 %v562_v15 }
  0xa9   :  { %v224_v17 = vpop.f32.mrf.mxu0  ;;  %v234_v18 = vpop.f32.mrf.mxu1 }
  0xaa   :  { %v319_v19 = vadd.f32 %v795_v16, %v224_v17  ;;  %v323_v20 = vadd.f32 %v795_v16, %v234_v18 }
  0xac   :  { %v351_v21 = vmul.f32 1.442695, %v319_v19  ;;  %v359_v22 = vmul.f32 1.442695, %v323_v20  ;;  %vm335_vm0 = vcmp.gt.f32.partialorder %v319_v19, 0.0  ;;  %vm339_vm1 = vcmp.gt.f32.partialorder %v323_v20, 0.0 }
  0xae   :  { %640 = vpow2.f32 %v351_v21 }
  0xaf   :  { %642 = vpow2.f32 %v359_v22 }
  0xb0   :  { %v244_v23 = vpop.f32.mrf.mxu2  ;;  %v254_v24 = vpop.f32.mrf.mxu3 }
  0xb1   :  { %v800_v25 = vadd.f32 %v795_v16, %v244_v23  ;;  %v226_v26 = vpop.f32.mrf.mxu0  ;;  %v236_v27 = vpop.f32.mrf.mxu1  ;;  %v803_v28 = vadd.f32 %v795_v16, %v254_v24 }
  0xb2   :  { %v320_v29 = vadd.f32 %v795_v16, %v226_v26  ;;  %v324_v30 = vadd.f32 %v795_v16, %v236_v27 }
  0xb3   :  { %v367_v31 = vmul.f32 1.442695, %v800_v25  ;;  %v375_v34 = vmul.f32 1.442695, %v803_v28  ;;  %vm343_vm4 = vcmp.gt.f32.partialorder %v800_v25, 0.0  ;;  %vm347_vm5 = vcmp.gt.f32.partialorder %v803_v28, 0.0 }
  0xb4   :  { %v353_v32 = vmul.f32 1.442695, %v320_v29  ;;  %v361_v33 = vmul.f32 1.442695, %v324_v30  ;;  %v641_v35 = vpop.eup %640  ;;  %vm336_vm2 = vcmp.gt.f32.partialorder %v320_v29, 0.0  ;;  %vm340_vm3 = vcmp.gt.f32.partialorder %v324_v30, 0.0 }
  0xb5   :  { %644 = vpow2.f32 %v367_v31  ;;  %v643_v38 = vpop.eup %642  ;;  %v531_v47 = vadd.f32 -1.0, %v641_v35 }
  0xb6   :  { %646 = vpow2.f32 %v353_v32  ;;  %v535_v48 = vadd.f32 -1.0, %v643_v38 }
  0xb7   :  { %648 = vpow2.f32 %v361_v33  ;;  %v399_v56 = vsel %vm335_vm0, %v319_v19, %v531_v47 }
  0xb8   :  { %v246_v36 = vpop.f32.mrf.mxu2  ;;  %v256_v37 = vpop.f32.mrf.mxu3  ;;  %650 = vpow2.f32 %v375_v34  ;;  %v403_v57 = vsel %vm339_vm1, %v323_v20, %v535_v48 }
  0xb9   :  { %v328_v39 = vadd.f32 %v795_v16, %v246_v36  ;;  %v332_v40 = vadd.f32 %v795_v16, %v256_v37  ;;  %v229_v41 = vpop.f32.mrf.mxu0  ;;  %v239_v42 = vpop.f32.mrf.mxu1 }
  0xba   :  { %v812_v45 = vadd.f32 %v795_v16, %v229_v41  ;;  %v815_v49 = vadd.f32 %v795_v16, %v239_v42 }
  0xbb   :  { %v369_v43 = vmul.f32 1.442695, %v328_v39  ;;  %v377_v44 = vmul.f32 1.442695, %v332_v40  ;;  %v645_v46 = vpop.eup %644  ;;  %vm344_vm6 = vcmp.gt.f32.partialorder %v328_v39, 0.0  ;;  %vm348_vm7 = vcmp.gt.f32.partialorder %v332_v40, 0.0 }
  0xbc   :  { %v647_v50 = vpop.eup %646  ;;  %v355_v54 = vmul.f32 1.442695, %v812_v45  ;;  %v363_v59 = vmul.f32 1.442695, %v815_v49  ;;  %v539_v62 = vadd.f32 -1.0, %v645_v46  ;;  %vm337_vm8 = vcmp.gt.f32.partialorder %v812_v45, 0.0 }
  0xbd   :  { %652 = vpow2.f32 %v369_v43  ;;  %v649_v51 = vpop.eup %648  ;;  %v532_v52 = vadd.f32 -1.0, %v647_v50  ;;  %vm341_vm10 = vcmp.gt.f32.partialorder %v815_v49, 0.0 }
  0xbe   :  { %654 = vpow2.f32 %v377_v44  ;;  %v536_v53 = vadd.f32 -1.0, %v649_v51  ;;  %v651_v55 = vpop.eup %650  ;;  %v407_v17 = vsel %vm343_vm4, %v800_v25, %v539_v62 }
  0xbf   :  { %v400_v58 = vsel %vm336_vm2, %v320_v29, %v532_v52  ;;  %v543_v9 = vadd.f32 -1.0, %v651_v55  ;;  %656 = vpow2.f32 %v355_v54 }
  0xc0   :  { %v249_v60 = vpop.f32.mrf.mxu2  ;;  %v259_v61 = vpop.f32.mrf.mxu3  ;;  %v566_v63 = vpack.c.bf16 %v400_v58, %v399_v56  ;;  %v404_v0 = vsel %vm340_vm3, %v324_v30, %v536_v53  ;;  %658 = vpow2.f32 %v363_v59 }
  0xc1   :  { %v820_v1 = vadd.f32 %v795_v16, %v249_v60  ;;  %v231_v2 = vpop.f32.mrf.mxu0  ;;  %v241_v3 = vpop.f32.mrf.mxu1  ;;  %v576_v4 = vpack.c.bf16 %v404_v0, %v403_v57  ;;  %v823_v5 = vadd.f32 %v795_v16, %v259_v61  ;;  %v411_v20 = vsel %vm347_vm5, %v803_v28, %v543_v9 }
  0xc2   :  { %v322_v6 = vadd.f32 %v795_v16, %v231_v2  ;;  %v326_v7 = vadd.f32 %v795_v16, %v241_v3  ;;  %567 = vst [vmem:[#allocation9] sm:$0xff] %v566_v63  }
  0xc3   :  { %v653_v8 = vpop.eup %652  ;;  %604 = vst [vmem:[#allocation9 + $0x10] sm:$0xff] %v576_v4   ;;  %v371_v12 = vmul.f32 1.442695, %v820_v1  ;;  %v379_v19 = vmul.f32 1.442695, %v823_v5  ;;  %vm345_vm12 = vcmp.gt.f32.partialorder %v820_v1, 0.0 }
  0xc4   :  { %v655_v10 = vpop.eup %654  ;;  %v540_v11 = vadd.f32 -1.0, %v653_v8  ;;  %v357_v14 = vmul.f32 1.442695, %v322_v6  ;;  %v365_v15 = vmul.f32 1.442695, %v326_v7  ;;  %vm338_vm9 = vcmp.gt.f32.partialorder %v322_v6, 0.0 }
  0xc5   :  { %v544_v13 = vadd.f32 -1.0, %v655_v10  ;;  %v657_v27 = vpop.eup %656  ;;  %vm342_vm11 = vcmp.gt.f32.partialorder %v326_v7, 0.0  ;;  %vm349_vm14 = vcmp.gt.f32.partialorder %v823_v5, 0.0 }
  0xc6   :  { %v408_v18 = vsel %vm344_vm6, %v328_v39, %v540_v11  ;;  %660 = vpow2.f32 %v357_v14  ;;  %v659_v30 = vpop.eup %658  ;;  %v533_v28 = vadd.f32 -1.0, %v657_v27 }
  0xc7   :  { %v586_v21 = vpack.c.bf16 %v408_v18, %v407_v17  ;;  %v412_v22 = vsel %vm348_vm7, %v332_v40, %v544_v13  ;;  %662 = vpow2.f32 %v365_v15  ;;  %v537_v34 = vadd.f32 -1.0, %v659_v30 }
  0xc8   :  { %v596_v23 = vpack.c.bf16 %v412_v22, %v411_v20  ;;  %v251_v24 = vpop.f32.mrf.mxu2  ;;  %v261_v26 = vpop.f32.mrf.mxu3  ;;  %664 = vpow2.f32 %v371_v12 }
  0xc9   :  { %606 = vst [vmem:[#allocation9 + $0x20] sm:$0xff] %v586_v21   ;;  %v330_v29 = vadd.f32 %v795_v16, %v251_v24  ;;  %v334_v25 = vadd.f32 %v795_v16, %v261_v26  ;;  %666 = vpow2.f32 %v379_v19  ;;  %v401_v16 = vsel %vm337_vm8, %v812_v45, %v533_v28 }
  0xca   :  { %608 = vst [vmem:[#allocation9 + $0x30] sm:$0xff] %v596_v23   ;;  %v405_v41 = vsel %vm341_vm10, %v815_v49, %v537_v34 }
  0xcb   :  { %v373_v31 = vmul.f32 1.442695, %v330_v29  ;;  %v381_v32 = vmul.f32 1.442695, %v334_v25  ;;  %vm346_vm13 = vcmp.gt.f32.partialorder %v330_v29, 0.0  ;;  %vm350_vm15 = vcmp.gt.f32.partialorder %v334_v25, 0.0 }
  0xcc   :  { %v661_v33 = vpop.eup %660 }
  0xcd   :  { %668 = vpow2.f32 %v373_v31  ;;  %v663_v35 = vpop.eup %662  ;;  %v534_v36 = vadd.f32 -1.0, %v661_v33 }
  0xce   :  { %670 = vpow2.f32 %v381_v32  ;;  %v665_v37 = vpop.eup %664  ;;  %v538_v38 = vadd.f32 -1.0, %v663_v35 }
  0xcf   :  { %v667_v39 = vpop.eup %666  ;;  %v402_v40 = vsel %vm338_vm9, %v322_v6, %v534_v36  ;;  %v541_v44 = vadd.f32 -1.0, %v665_v37 }
  0xd0   :  { %v571_v42 = vpack.c.bf16 %v402_v40, %v401_v16  ;;  %v406_v43 = vsel %vm342_vm11, %v326_v7, %v538_v38  ;;  %v545_v48 = vadd.f32 -1.0, %v667_v39 }
  0xd1   :  { %v581_v46 = vpack.c.bf16 %v406_v43, %v405_v41  ;;  %v409_v49 = vsel %vm345_vm12, %v820_v1, %v541_v44 }
  0xd2   :  { %603 = vst [vmem:[#allocation9 + $0x8] sm:$0xff] %v571_v42   ;;  %v413_v53 = vsel %vm349_vm14, %v823_v5, %v545_v48 }
  0xd3   :  { %v669_v47 = vpop.eup %668  ;;  %605 = vst [vmem:[#allocation9 + $0x18] sm:$0xff] %v581_v46  }
  0xd4   :  { %v671_v50 = vpop.eup %670  ;;  %v542_v51 = vadd.f32 -1.0, %v669_v47 }
  0xd5   :  { %v546_v45 = vadd.f32 -1.0, %v671_v50 }
  0xd6   :  { %v410_v52 = vsel %vm346_vm13, %v330_v29, %v542_v51 }
  0xd7   :  { %v591_v54 = vpack.c.bf16 %v410_v52, %v409_v49  ;;  %v414_v55 = vsel %vm350_vm15, %v334_v25, %v546_v45 }
  0xd8   :  { %v601_v56 = vpack.c.bf16 %v414_v55, %v413_v53 }
  0xd9   :  { %607 = vst [vmem:[#allocation9 + $0x28] sm:$0xff] %v591_v54  }
  0xda   :  { %609 = vst [vmem:[#allocation9 + $0x38] sm:$0xff] %v601_v56  }
  0xdb   :  { %459 = dma.vmem_to_hbm [thread:$0]  %s452_s26, 1024, %s454_s29, [#allocation6], %s751_s23, %s751_s23, %s752_s3  }
  0xdc   :  { %748 = dma.done.wait [#allocation6], 1024  }
  0xdd   :  { %749 = vsyncadd [#allocation6], 4294966272 }
  0xde   :  { %464 = vsyncpa [#allocation5], 1 }
  0xdf   :  { %465 = vsyncpa [#allocation8], 1 }
  0xe0   :  { %466 = vsyncpa [#allocation6], 1 }

</bundles_post_ra>
